<compile_context>
chip_gen: v6e
topology: v6e:2x2x1
jax: 0.10.0
libtpu: 0.0.40
codegen_flags: <defaults>
</compile_context>

<pallas_src>
import jax
import jax.numpy as jnp
from jax import lax
from jax.experimental import pallas as pl
from jax.experimental.pallas import tpu as pltpu

_MiB = 1024 * 1024


def _round_up(x, m):
    return ((x + m - 1) // m) * m


def _clamp_vmem(nbytes):
    # Floor generously for tiny problems; ceiling safe for v7x's 64 MiB per-TC VMEM.
    return int(min(max(nbytes, 8 * _MiB), 64 * _MiB))


def _normalize_kernel(x_ref, xn_ref, xnt_ref, sq_ref):
    """L2-normalize rows (torch normalize semantics), emit bf16 features, their
    transpose, and the exact f32 squared norms of the bf16-quantized rows."""
    x = x_ref[...].astype(jnp.float32)                               # (tm, d)
    ssq = jnp.sum(x * x, axis=-1, keepdims=True)                     # (tm, 1)
    # 1/(sqrt(s)+1e-12) ~= rsqrt(s + 1e-24); exact for all-zero rows (-> 0 output).
    inv = lax.rsqrt(ssq + 1e-24)
    xb = (x * inv).astype(jnp.bfloat16)                              # (tm, d) bf16
    xn_ref[...] = xb
    xnt_ref[...] = jnp.transpose(xb)                                 # (d, tm)
    xq = xb.astype(jnp.float32)
    sq_ref[...] = jnp.sum(xq * xq, axis=-1, keepdims=True)           # exact ||quantized row||^2


def _wrt_row_kernel(q_ref, kt_ref, qlab_ref, klab_ref, sqq_ref, sqk_ref, loss_ref):
    tm = q_ref.shape[0]

    # ---- Gram block on the MXU: canonical [M,K] x [K,N], bf16 operands, f32 acc ----
    gram = lax.dot_general(
        q_ref[...], kt_ref[...], (((1,), (0,)), ((), ())),
        preferred_element_type=jnp.float32)                          # (tm, n)

    # Exact distances of the bf16-quantized rows: dist^2 = sq_q + sq_k^T - 2*gram.
    dist2 = sqq_ref[...] + sqk_ref[...] - 2.0 * gram
    dist = jnp.sqrt(jnp.maximum(dist2, 1e-12))                       # (tm, n)

    # ---- boolean pos / neg masks built per tile from the label column / row ----
    qlab = qlab_ref[...]                                             # (tm, 1) int32
    klab = klab_ref[...]                                             # (1, n) int32
    pos = qlab == klab                                               # (tm, n) bool
    valid_key = klab >= 0                                            # (1, n)  bool; pad cols excluded
    neg = jnp.logical_and(jnp.logical_not(pos), valid_key)           # (tm, n) bool

    # Positive branch: softmax_weights(dist_ap, is_pos) folded into the weighted sum.
    dist_ap = jnp.where(pos, dist, 0.0)
    max_p = jnp.max(dist_ap, axis=1, keepdims=True)                  # (tm, 1)
    ep = jnp.where(pos, jnp.exp(dist_ap - max_p), 0.0)               # (tm, n)
    zp = jnp.sum(ep, axis=1, keepdims=True) + 1e-6
    furthest_positive = jnp.sum(dist_ap * ep, axis=1, keepdims=True) / zp

    # Negative branch: the reference's max term is exactly 0 (skipped).
    en = jnp.where(neg, jnp.exp(-dist), 0.0)                         # (tm, n)
    zn = jnp.sum(en, axis=1, keepdims=True) + 1e-6
    closest_negative = jnp.sum(dist * en, axis=1, keepdims=True) / zn

    # SoftMarginLoss(cn - fp, y=1) per row: log(1 + exp(-(cn - fp))).
    # |cn - fp| <= 2 (unit vectors), so the plain form is overflow/precision safe.
    margin = closest_negative - furthest_positive                    # (tm, 1)
    loss = jnp.log(1.0 + jnp.exp(-margin))
    loss_ref[...] = jnp.transpose(loss)                              # lane-dense (1, tm) store


def weighted_regularized_triplet(inputs, targets, *, tm=None):
    """inputs: [N, D] float features; targets: [N] int labels (>= 0). Returns scalar loss."""
    n, d = inputs.shape
    if tm is None:
        # 256 matches the v6e/v7x 2x256^2 MXU; pass tm=128 explicitly on v5e (4x128^2).
        tm = 256 if n >= 256 else _round_up(n, 8)
    n_pad = _round_up(n, tm)

    x = inputs
    t = targets.astype(jnp.int32)
    if n_pad != n:
        # Pad with zero rows + sentinel label -1 (excluded as keys and from the mean).
        x = jnp.pad(x, ((0, n_pad - n), (0, 0)))
        t = jnp.pad(t, (0, n_pad - n), constant_values=-1)

    # ---- pass 1: L2 normalize (pure HBM bandwidth) with the largest tile that fits ----
    if n_pad <= 1024:
        tm_norm = n_pad
    else:
        tm_norm = next(c for c in (1024, 512, 256, tm) if n_pad % c == 0)

    norm_est = (2 * tm_norm * d * (4 + 2)        # in f32 + out bf16, double-buffered
                + 2 * d * tm_norm * 2            # transposed out, double-buffered
                + 2 * 8 * tm_norm * 4            # sq column
                + 4 * tm_norm * d * 4)           # f32 temporaries
    norm_vmem = _clamp_vmem(int(norm_est * 1.5) + 2 * _MiB)

    xn, xnt, sq = pl.pallas_call(
        _normalize_kernel,
        out_shape=(jax.ShapeDtypeStruct((n_pad, d), jnp.bfloat16),
                   jax.ShapeDtypeStruct((d, n_pad), jnp.bfloat16),
                   jax.ShapeDtypeStruct((n_pad, 1), jnp.float32)),
        grid=(n_pad // tm_norm,),
        in_specs=[pl.BlockSpec((tm_norm, d), lambda i: (i, 0))],
        out_specs=(pl.BlockSpec((tm_norm, d), lambda i: (i, 0)),
                   pl.BlockSpec((d, tm_norm), lambda i: (0, i)),
                   pl.BlockSpec((tm_norm, 1), lambda i: (i, 0))),
        compiler_params=pltpu.CompilerParams(
            dimension_semantics=("parallel",),
            vmem_limit_bytes=norm_vmem),
    )(x)

    tcol = t.reshape(n_pad, 1)
    trow = t.reshape(1, n_pad)
    sq_row = sq.reshape(1, n_pad)

    # ---- pass 2: row-tiled loss kernel ----
    loss_est = (n_pad * d * 2                       # resident K^T bf16, single-buffered
                + 2 * 8 * n_pad * 4                 # resident key labels + key sq-norms
                + 2 * (tm * d * 2 + 3 * 8 * tm * 4)  # double-buffered q tile + small columns
                + 8 * tm * n_pad * 4)               # live (tm, N) f32 temporaries
    loss_vmem = _clamp_vmem(int(loss_est * 1.5) + 2 * _MiB)

    per_row = pl.pallas_call(
        _wrt_row_kernel,
        out_shape=jax.ShapeDtypeStruct((1, n_pad), jnp.float32),
        grid=(n_pad // tm,),
        in_specs=[
            pl.BlockSpec((tm, d), lambda i: (i, 0)),        # query row tile (streamed)
            pl.BlockSpec((d, n_pad), lambda i: (0, 0),      # K^T, resident, single buffer
                         pipeline_mode=pl.Buffered(1)),
            pl.BlockSpec((tm, 1), lambda i: (i, 0)),        # query labels (column, streamed)
            pl.BlockSpec((1, n_pad), lambda i: (0, 0),      # key labels (row, resident)
                         pipeline_mode=pl.Buffered(1)),
            pl.BlockSpec((tm, 1), lambda i: (i, 0)),        # query sq-norms (streamed)
            pl.BlockSpec((1, n_pad), lambda i: (0, 0),      # key sq-norms (resident)
                         pipeline_mode=pl.Buffered(1)),
        ],
        out_specs=pl.BlockSpec((1, tm), lambda i: (0, i)),  # lane-dense per-row losses
        compiler_params=pltpu.CompilerParams(
            dimension_semantics=("parallel",),
            vmem_limit_bytes=loss_vmem),
    )(xn, xnt, tcol, trow, sq, sq_row)

    # Final mean over the N real rows outside the kernel (keeps the row axis "parallel").
    return jnp.mean(per_row[0, :n])


def _reference(inputs, targets):
    """Pure-JAX reference mirroring the PyTorch module, for a sanity check."""
    x = inputs.astype(jnp.float32)
    xn = x / (jnp.linalg.norm(x, axis=-1, keepdims=True) + 1e-12)
    sq = jnp.sum(xn * xn, axis=-1, keepdims=True)
    dist2 = sq + sq.T - 2.0 * xn @ xn.T
    dist = jnp.sqrt(jnp.maximum(dist2, 1e-12))
    is_pos = (targets[:, None] == targets[None, :]).astype(jnp.float32)
    is_neg = 1.0 - is_pos

    def softmax_weights(dd, mask):
        max_v = jnp.max(dd * mask, axis=1, keepdims=True)
        diff = dd - max_v
        z = jnp.sum(jnp.exp(diff) * mask, axis=1, keepdims=True) + 1e-6
        return jnp.exp(diff) * mask / z

    dist_ap = dist * is_pos
    dist_an = dist * is_neg
    w_ap = softmax_weights(dist_ap, is_pos)
    w_an = softmax_weights(-dist_an, is_neg)
    fp = jnp.sum(dist_ap * w_ap, axis=1)
    cn = jnp.sum(dist_an * w_an, axis=1)
    return jnp.mean(jnp.log1p(jnp.exp(-(cn - fp))))


if __name__ == "__main__":
    key = jax.random.PRNGKey(0)
    N, D = 8, 32                          # small batch of features
    inputs = jax.random.normal(key, (N, D), dtype=jnp.float32)
    # 4 identities x 2 samples each -> every row has positives and negatives.
    targets = jnp.array([0, 0, 1, 1, 2, 2, 3, 3], dtype=jnp.int32)

    loss = weighted_regularized_triplet(inputs, targets)
    jax.block_until_ready(loss)

    ref = _reference(inputs, targets)
    # Only remaining drift vs the f32 reference is bf16 quantization of the
    # unit-norm features (distances of the quantized rows are now exact).
    assert jnp.allclose(loss, ref, atol=5e-3, rtol=5e-3), (loss, ref)
    print("KERNEL_OK")
</pallas_src>

<mosaic_0001>
module attributes {stable_mosaic.version = 11 : i64} {
  func.func @_normalize_kernel(%arg0: i32, %arg1: memref<8x32xf32, #tpu.memory_space<vmem>>, %arg2: memref<8x32xbf16, #tpu.memory_space<vmem>>, %arg3: memref<32x8xbf16, #tpu.memory_space<vmem>>, %arg4: memref<8x1xf32, #tpu.memory_space<vmem>>) attributes {dimension_semantics = [#tpu.dimension_semantics<parallel>], iteration_bounds = array<i64: 1>, scalar_prefetch = 0 : i64, scratch_operands = 0 : i64, tpu.core_type = #tpu.core_type<tc>, window_params = [{transform_indices = @transform_0, window_bounds = array<i64: 8, 32>}, {transform_indices = @transform_1, window_bounds = array<i64: 8, 32>}, {transform_indices = @transform_2, window_bounds = array<i64: 32, 8>}, {transform_indices = @transform_3, window_bounds = array<i64: 8, 1>}]} {
    %c0 = arith.constant 0 : index
    %c0_0 = arith.constant 0 : index
    %0 = vector.load %arg1[%c0, %c0_0] : memref<8x32xf32, #tpu.memory_space<vmem>>, vector<8x32xf32>
    %1 = arith.mulf %0, %0 : vector<8x32xf32>
    %cst = arith.constant dense<0.000000e+00> : vector<8xf32>
    %2 = vector.multi_reduction <add>, %1, %cst [1] : vector<8x32xf32> to vector<8xf32>
    %3 = vector.shape_cast %2 : vector<8xf32> to vector<8x1xf32>
    %cst_1 = arith.constant 1.000000e-24 : f32
    %4 = vector.broadcast %cst_1 : f32 to vector<8x1xf32>
    %5 = arith.addf %3, %4 : vector<8x1xf32>
    %6 = math.rsqrt %5 : vector<8x1xf32>
    %7 = vector.broadcast %6 : vector<8x1xf32> to vector<8x32xf32>
    %8 = arith.mulf %0, %7 : vector<8x32xf32>
    %9 = arith.truncf %8 : vector<8x32xf32> to vector<8x32xbf16>
    %c0_2 = arith.constant 0 : index
    %c0_3 = arith.constant 0 : index
    %10 = vector.load %arg2[%c0_2, %c0_3] : memref<8x32xbf16, #tpu.memory_space<vmem>>, vector<8x32xbf16>
    tpu.vector_store %arg2[%c0_2, %c0_3], %9 {strides = array<i32>} : memref<8x32xbf16, #tpu.memory_space<vmem>>, vector<8x32xbf16>,
    %11 = tpu.transpose %9, [1, 0] : vector<8x32xbf16> -> vector<32x8xbf16>
    %c0_4 = arith.constant 0 : index
    %c0_5 = arith.constant 0 : index
    %12 = vector.load %arg3[%c0_4, %c0_5] : memref<32x8xbf16, #tpu.memory_space<vmem>>, vector<32x8xbf16>
    tpu.vector_store %arg3[%c0_4, %c0_5], %11 {strides = array<i32>} : memref<32x8xbf16, #tpu.memory_space<vmem>>, vector<32x8xbf16>,
    %13 = arith.extf %9 : vector<8x32xbf16> to vector<8x32xf32>
    %14 = arith.mulf %13, %13 : vector<8x32xf32>
    %cst_6 = arith.constant dense<0.000000e+00> : vector<8xf32>
    %15 = vector.multi_reduction <add>, %14, %cst_6 [1] : vector<8x32xf32> to vector<8xf32>
    %16 = vector.shape_cast %15 : vector<8xf32> to vector<8x1xf32>
    %c0_7 = arith.constant 0 : index
    %c0_8 = arith.constant 0 : index
    %17 = vector.load %arg4[%c0_7, %c0_8] : memref<8x1xf32, #tpu.memory_space<vmem>>, vector<8x1xf32>
    tpu.vector_store %arg4[%c0_7, %c0_8], %16 {strides = array<i32>} : memref<8x1xf32, #tpu.memory_space<vmem>>, vector<8x1xf32>,
    return
  }
  func.func @transform_0(%arg0: i32) -> (i32, i32) {
    %c0_i32 = arith.constant 0 : i32
    %c0_i32_0 = arith.constant 0 : i32
    return %arg0, %c0_i32 : i32, i32
  }
  func.func @transform_1(%arg0: i32) -> (i32, i32) {
    %c0_i32 = arith.constant 0 : i32
    %c0_i32_0 = arith.constant 0 : i32
    return %arg0, %c0_i32 : i32, i32
  }
  func.func @transform_2(%arg0: i32) -> (i32, i32) {
    %c0_i32 = arith.constant 0 : i32
    %c0_i32_0 = arith.constant 0 : i32
    return %c0_i32, %arg0 : i32, i32
  }
  func.func @transform_3(%arg0: i32) -> (i32, i32) {
    %c0_i32 = arith.constant 0 : i32
    %c0_i32_0 = arith.constant 0 : i32
    return %arg0, %c0_i32 : i32, i32
  }
}

</mosaic_0001>

<bundles_post_ra>
// kernel: tpu_custom_call.1
= control target key start
LH: loop header
LB: loop body
LE: loop exit
PB: predicated region body
PF: predicated region fallthrough
CT: control target
= control target key end

     0   :  { %9 = vsyncpa [#allocation3], 0  ;;  %s198_s0 = inlined_call_operand.hbm [shape: f32[8,32], index: 0, kind: input, shape index: {}]   ;;  %s199_s1 = inlined_call_operand.hbm [shape: bf16[8,32], index: 1, kind: output, shape index: {0}]   ;;  %s200_s2 = inlined_call_operand.vmem [shape: bf16[32,8], index: 2, kind: output, shape index: {1}]   ;;  %s201_s3 = inlined_call_operand.vmem [shape: f32[8,1], index: 3, kind: output, shape index: {2}]  }
   0x1   :  { %10 = vsyncpa [#allocation4], 0  ;;  %s155_s12 = smov [#allocation2]  }
   0x2   :  { %s17_s13 = sshll.u32 %s155_s12, 4  ;;  %s18_s13 = int_to_ptr.vmem [resolvable:$true] %s17_s13 }
   0x3   :  { %s119_s14 = scalar_lea.vmem %s18_s13, 128  ;;  %p124_p1 = scmp.lt.s32.totalorder %s18_s13, %s18_s13 }
   0x4   :  { %p120_p0 = scmp.ne.s32.totalorder %s18_s13, %s119_s14  ;;  %p125_p2 = scmp.lt.s32.totalorder %s119_s14, %s119_s14 }
   0x6   :  { %p126_p3 = por %p125_p2, %p124_p1 }
   0x8   :  { %p127_p4 = pnand %p126_p3, %p120_p0 }
   0xa   :  { %130 = shalt.err (!%p127_p4)
}
   0xb   :  { %20 = dma.hbm_to_vmem [thread:$0]  %s198_s0, 128, %s18_s13, [#allocation3]  }
   0xc   :  { %151 = dma.done.wait [#allocation3], 128  }
   0xd   :  { %152 = vsyncadd [#allocation3], 4294967168  ;;  %v25_v0 = vld [vmem:[#allocation2] sm:$0xff]  ;;  %vm27_vm0 = vcmask 261120   ;;  %vm35_vm1 = vcmask 257024   ;;  %s156_s0 = smov [#allocation5]  }
   0xe   :  { %v26_v1 = vmul.f32 %v25_v0, %v25_v0  ;;  %s85_s17 = sshll.u32 %s156_s0, 4  ;;  %s86_s17 = int_to_ptr.vmem [resolvable:$true] %s85_s17 }
   0xf   :  { %s131_s18 = scalar_lea.vmem %s86_s17, 64  ;;  %p136_p6 = scmp.lt.s32.totalorder %s86_s17, %s86_s17 }
  0x10   :  { %v28_v2 = vsel %vm27_vm0, %v26_v1, 0.0  ;;  %p132_p5 = scmp.ne.s32.totalorder %s86_s17, %s131_s18  ;;  %p137_p7 = scmp.lt.s32.totalorder %s131_s18, %s131_s18 }
  0x11   :  { %29 = vadd.xlane.f32.xlu0 %v28_v2 }
  0x12   :  { %p138_p8 = por %p137_p7, %p136_p6 }
  0x14   :  { %p139_p9 = pnand %p138_p8, %p132_p5 }
  0x9a   :  { %v30_v3 = vpop.xlane.xlu0 %29 }
  0x9b   :  { %v31_v4 = vadd.f32 1e-24, %v30_v3 }
  0x9d   :  { %109 = vrsqrt.f32 %v31_v4 }
  0xaa   :  { %v110_v5 = vpop.eup %109 }
  0xab   :  { %v33_v6 = vmul.f32 %v110_v5, %v25_v0 }
  0xad   :  { %v34_v7 = vpack.c.bf16 %v33_v6, %v33_v6 }
  0xaf   :  { %37 = vxpose.xlu1.c.b16.start.end [1/1] (short) (narrow) %v34_v7, 32  ;;  %v72_v8 = vunpack.c.l.bf16 %v34_v7  ;;  %36 = vst.msk [vmem:[#allocation5] sm:$0xf] %vm35_vm1, %v34_v7 }
  0xb1   :  { %v73_v9 = vmul.f32 %v72_v8, %v72_v8 }
  0xb3   :  { %v74_v10 = vsel %vm27_vm0, %v73_v9, 0.0 }
  0xb4   :  { %75 = vadd.xlane.f32.xlu0 %v74_v10 }
  0xb5   :  { %142 = shalt.err (!%p139_p9)
}
  0xb6   :  { %88 = dma.vmem_to_hbm [thread:$0]  %s86_s17, 64, %s199_s1, [#allocation4]   ;;  %vm67_vm2 = vcmask 60416   ;;  %vm77_vm3 = vcmask 7168  }
 0x111   :  { %v45_v11 = vpop.trf.xlu1 }
 0x112   :  { %v102_v12 = vcombine.low %v45_v11, %v45_v11  ;;  %v103_v13 = vcombine.high %v45_v11, %v45_v11 }
 0x114   :  { %68 = vst.msk [vmem:[%s200_s2] sm:$0xf] %vm67_vm2, %v102_v12  ;;  %69 = vst.msk [vmem:[%s200_s2 + $0x4] sm:$0xf] %vm67_vm2, %v103_v13 }
 0x115   :  { %v46_v14 = vpop.trf.xlu1 }
 0x116   :  { %v104_v15 = vcombine.low %v46_v14, %v46_v14  ;;  %v105_v16 = vcombine.high %v46_v14, %v46_v14 }
 0x118   :  { %70 = vst.msk [vmem:[%s200_s2 + $0x8] sm:$0xf] %vm67_vm2, %v104_v15  ;;  %71 = vst.msk [vmem:[%s200_s2 + $0xc] sm:$0xf] %vm67_vm2, %v105_v16 }
 0x13d   :  { %v76_v17 = vpop.xlane.xlu0 %75 }
 0x13e   :  { %78 = vst.msk [vmem:[%s201_s3] sm:$0xff] %vm77_vm3, %v76_v17 }
 0x13f   :  { %153 = dma.done.wait [#allocation4], 64  }
 0x140   :  { %154 = vsyncadd [#allocation4], 4294967232 }
 0x141   :  { %100 = vsyncpa [#allocation3], 1 }
 0x142   :  { %101 = vsyncpa [#allocation4], 1 }

</bundles_post_ra>
